<compile_context>
chip_gen: v7x
topology: tpu7x:2x2x1
jax: 0.10.0
libtpu: 0.0.40
codegen_flags: <defaults>
</compile_context>

<pallas_src>
import functools

import jax
import jax.numpy as jnp
from jax.experimental import pallas as pl
from jax.experimental.pallas import tpu as pltpu


def _round_up(x: int, m: int) -> int:
    return (x + m - 1) // m * m


def _round_down(x: int, m: int) -> int:
    return x // m * m


def _cluster_loss_kernel(t_ref, p_ref, o_ref, *, n_steps: int, block_rows: int,
                         width: int, eps: float, valid_rows=None):
    j = pl.program_id(1)   # "arbitrary" reduction axis

    # Output block is resident across j -> it is the vreg-shaped partial-sum
    # accumulator.  Zero it at the start of each reduction sweep.
    @pl.when(j == 0)
    def _():
        o_ref[...] = jnp.zeros_like(o_ref)

    t = t_ref[...].astype(jnp.float32)
    p = p_ref[...].astype(jnp.float32)
    # TODO(synk): if profiles show EUP/VALU-bound (bf16 on v6e/v7x), evaluate
    # t * (jnp.log(t) - jnp.log(p + eps)) or approx-reciprocal + Newton step.
    val = t * jnp.log(t / (p + eps))

    if valid_rows is not None:
        # Statically-compiled mask: only used for the tiny (<8 logical rows)
        # padded path, where the single block contains zero-padded rows that
        # would otherwise contribute 0 * log(0) = NaN.
        i = pl.program_id(0)
        row0 = (i * n_steps + j) * block_rows
        rows_g = row0 + jax.lax.broadcasted_iota(jnp.int32, (block_rows, width), 0)
        val = jnp.where(rows_g < valid_rows, val, 0.0)

    # Fold the tile to one vreg-shaped (8, width) slab with VPU adds only;
    # the cross-lane reduce + divide happen once, outside the kernel.
    o_ref[...] += val.reshape(block_rows // 8, 8, width).sum(axis=0)


def cluster_loss(target: jax.Array, pred: jax.Array, *, eps: float = 1e-6,
                 vmem_budget_bytes: int = 16 * 1024 * 1024) -> jax.Array:
    """KL-style cluster loss. target/pred: any shape, last dim = classes."""
    assert target.shape == pred.shape
    k = target.shape[-1]
    n_valid = int(target.size)
    assert n_valid > 0
    n_rows_orig = n_valid // k            # the torch.mean divisor

    # Lane-dense re-view (free reshape): widest lane multiple dividing the
    # element count; otherwise fall back to the natural class dim (a block
    # last dim equal to the full array dim is always legal).
    width = k
    for cand in (512, 256, 128):
        if n_valid % cand == 0:
            width = cand
            break

    rows = n_valid // width
    t2 = target.reshape(rows, width)
    p2 = pred.reshape(rows, width)

    valid_rows = None
    if rows < 8:
        # Tiny input: pad the row dim to one sublane tile (tiny copy) and use
        # the statically-compiled in-kernel row mask.
        t2 = jnp.pad(t2, ((0, 8 - rows), (0, 0)))
        p2 = jnp.pad(p2, ((0, 8 - rows), (0, 0)))
        valid_rows = rows
        rows = 8

    # Tile sizing: 2 inputs x 2 pipeline buffers x tile <= budget.  The lane
    # dim is padded to 128 in VMEM, so budget against the padded width.
    itemsize = jnp.dtype(target.dtype).itemsize
    width_vmem = _round_up(width, 128)
    max_block_rows = max(8, _round_down(
        vmem_budget_bytes // (4 * width_vmem * itemsize), 8))
    block_rows = min(max_block_rows, _round_down(rows, 8))

    # The kernel consumes only whole blocks (always fully valid -> no mask in
    # the hot loop, no partial-block DMA); the ragged row tail is < one block.
    n_blocks = rows // block_rows
    rows_main = n_blocks * block_rows

    # Optional 2-way split of the row reduction for megacore (v7x); harmless
    # elsewhere.  Only split when it is exact so every block index is valid.
    # TODO(synk): if v7x profiles show one idle TC, switch to CORE_PARALLEL.
    n_par = 2 if (n_blocks >= 4 and n_blocks % 2 == 0) else 1
    n_steps = n_blocks // n_par

    kernel = functools.partial(
        _cluster_loss_kernel, n_steps=n_steps, block_rows=block_rows,
        width=width, eps=eps, valid_rows=valid_rows)

    n_main = rows_main * width
    cost = pl.CostEstimate(
        flops=4 * n_main,
        transcendentals=2 * n_main,                 # log + divide per element
        bytes_accessed=2 * n_main * itemsize + n_par * 8 * width * 4)

    partials = pl.pallas_call(
        kernel,
        out_shape=jax.ShapeDtypeStruct((n_par * 8, width), jnp.float32),
        grid_spec=pltpu.PrefetchScalarGridSpec(
            num_scalar_prefetch=0,
            grid=(n_par, n_steps),
            in_specs=[
                pl.BlockSpec((block_rows, width),
                             lambda i, j: (i * n_steps + j, 0)),
                pl.BlockSpec((block_rows, width),
                             lambda i, j: (i * n_steps + j, 0)),
            ],
            out_specs=pl.BlockSpec((8, width), lambda i, j: (i, 0)),
        ),
        compiler_params=pltpu.CompilerParams(
            dimension_semantics=("parallel", "arbitrary"),
            vmem_limit_bytes=32 * 1024 * 1024),
        cost_estimate=cost,
    )(t2, p2)

    total = jnp.sum(partials)

    if rows_main < rows:
        # Ragged tail: fewer than one block of rows; tiny XLA reduction.
        tt = t2[rows_main:].astype(jnp.float32)
        pt = p2[rows_main:].astype(jnp.float32)
        total = total + jnp.sum(tt * jnp.log(tt / (pt + eps)))

    return total / jnp.float32(n_rows_orig)


def cluster_loss_ref(target, pred, eps=1e-6):
    return jnp.mean(jnp.sum(target * jnp.log(target / (pred + eps)), axis=-1))


if __name__ == "__main__":
    key = jax.random.PRNGKey(0)
    k_t, k_p, k_t2, k_p2, k_t3, k_p3 = jax.random.split(key, 6)

    # Case 1: batch of 16 rows, 32 cluster classes; softmax distributions
    # (strictly positive), matching typical usage of this KL-style loss.
    n, c = 16, 32
    target = jax.nn.softmax(jax.random.normal(k_t, (n, c), jnp.float32), axis=-1)
    pred = jax.nn.softmax(jax.random.normal(k_p, (n, c), jnp.float32), axis=-1)
    out = jax.block_until_ready(cluster_loss(target, pred))
    ref = jax.block_until_ready(cluster_loss_ref(target, pred))
    assert jnp.allclose(out, ref, rtol=1e-5, atol=1e-6), (out, ref)

    # Case 2: odd, non-divisible shape (natural-width fallback + row tail).
    t_odd = jax.nn.softmax(jax.random.normal(k_t2, (2, 7, 33), jnp.float32), axis=-1)
    p_odd = jax.nn.softmax(jax.random.normal(k_p2, (2, 7, 33), jnp.float32), axis=-1)
    out2 = jax.block_until_ready(cluster_loss(t_odd, p_odd))
    ref2 = jax.block_until_ready(cluster_loss_ref(t_odd, p_odd))
    assert jnp.allclose(out2, ref2, rtol=1e-5, atol=1e-6), (out2, ref2)

    # Case 3: lane-dense re-tiling path with a ragged row tail.
    t3 = jax.nn.softmax(jax.random.normal(k_t3, (40, 7, 128), jnp.float32), axis=-1)
    p3 = jax.nn.softmax(jax.random.normal(k_p3, (40, 7, 128), jnp.float32), axis=-1)
    out3 = jax.block_until_ready(cluster_loss(t3, p3))
    ref3 = jax.block_until_ready(cluster_loss_ref(t3, p3))
    assert jnp.allclose(out3, ref3, rtol=1e-5, atol=1e-6), (out3, ref3)

    print("KERNEL_OK")
</pallas_src>

<mosaic_0001>
module attributes {stable_mosaic.version = 11 : i64} {
  func.func @_cluster_loss_kernel(%arg0: i32, %arg1: i32, %arg2: memref<8x512xf32, #tpu.memory_space<vmem>>, %arg3: memref<8x512xf32, #tpu.memory_space<vmem>>, %arg4: memref<8x512xf32, #tpu.memory_space<vmem>>) attributes {dimension_semantics = [#tpu.dimension_semantics<parallel>, #tpu.dimension_semantics<arbitrary>], iteration_bounds = array<i64: 1, 1>, scalar_prefetch = 0 : i64, scratch_operands = 0 : i64, tpu.core_type = #tpu.core_type<tc>, window_params = [{transform_indices = @transform_0, window_bounds = array<i64: 8, 512>}, {transform_indices = @transform_1, window_bounds = array<i64: 8, 512>}, {transform_indices = @transform_2, window_bounds = array<i64: 8, 512>}]} {
    %c0_i32 = arith.constant 0 : i32
    %0 = arith.cmpi eq, %arg1, %c0_i32 : i32
    %1 = arith.extui %0 : i1 to i32
    %c0_i32_0 = arith.constant 0 : i32
    %2 = arith.cmpi ne, %1, %c0_i32_0 : i32
    scf.if %2 {
      %cst_11 = arith.constant 0.000000e+00 : f32
      %25 = vector.broadcast %cst_11 : f32 to vector<8x512xf32>
      %c0_12 = arith.constant 0 : index
      %c0_13 = arith.constant 0 : index
      %26 = vector.load %arg4[%c0_12, %c0_13] : memref<8x512xf32, #tpu.memory_space<vmem>>, vector<8x512xf32>
      tpu.vector_store %arg4[%c0_12, %c0_13], %25 {strides = array<i32>} : memref<8x512xf32, #tpu.memory_space<vmem>>, vector<8x512xf32>,
    } else {
    }
    %c0 = arith.constant 0 : index
    %c0_1 = arith.constant 0 : index
    %3 = vector.load %arg2[%c0, %c0_1] : memref<8x512xf32, #tpu.memory_space<vmem>>, vector<8x512xf32>
    %c0_2 = arith.constant 0 : index
    %c0_3 = arith.constant 0 : index
    %4 = vector.load %arg3[%c0_2, %c0_3] : memref<8x512xf32, #tpu.memory_space<vmem>>, vector<8x512xf32>
    %cst = arith.constant 9.99999997E-7 : f32
    %5 = vector.broadcast %cst : f32 to vector<8x512xf32>
    %6 = arith.addf %4, %5 : vector<8x512xf32>
    %7 = arith.divf %3, %6 : vector<8x512xf32>
    %8 = math.log %7 : vector<8x512xf32>
    %9 = arith.mulf %3, %8 : vector<8x512xf32>
    %c1_i32 = arith.constant 1 : i32
    %10 = arith.muli %arg0, %c1_i32 : i32
    %11 = arith.addi %10, %arg1 : i32
    %c8_i32 = arith.constant 8 : i32
    %12 = arith.muli %11, %c8_i32 : i32
    %13 = tpu.iota {dimensions = array<i32: 0>} : vector<8x512xi32>
    %14 = vector.broadcast %12 : i32 to vector<8x512xi32>
    %15 = arith.addi %14, %13 : vector<8x512xi32>
    %c1_i32_4 = arith.constant 1 : i32
    %16 = vector.broadcast %c1_i32_4 : i32 to vector<8x512xi32>
    %17 = arith.cmpi slt, %15, %16 : vector<8x512xi32>
    %cst_5 = arith.constant 0.000000e+00 : f32
    %18 = vector.broadcast %cst_5 : f32 to vector<8x512xf32>
    %19 = arith.select %17, %9, %18 : vector<8x512xi1>, vector<8x512xf32>
    %c0_6 = arith.constant 0 : index
    %c0_7 = arith.constant 0 : index
    %20 = vector.load %arg4[%c0_6, %c0_7] : memref<8x512xf32, #tpu.memory_space<vmem>>, vector<8x512xf32>
    %21 = vector.shape_cast %19 : vector<8x512xf32> to vector<1x8x512xf32>
    %cst_8 = arith.constant dense<0.000000e+00> : vector<8x512xf32>
    %22 = vector.multi_reduction <add>, %21, %cst_8 [0] : vector<1x8x512xf32> to vector<8x512xf32>
    %23 = arith.addf %20, %22 : vector<8x512xf32>
    %c0_9 = arith.constant 0 : index
    %c0_10 = arith.constant 0 : index
    %24 = vector.load %arg4[%c0_9, %c0_10] : memref<8x512xf32, #tpu.memory_space<vmem>>, vector<8x512xf32>
    tpu.vector_store %arg4[%c0_9, %c0_10], %23 {strides = array<i32>} : memref<8x512xf32, #tpu.memory_space<vmem>>, vector<8x512xf32>,
    return
  }
  func.func @transform_0(%arg0: i32, %arg1: i32) -> (i32, i32) {
    %c1_i32 = arith.constant 1 : i32
    %0 = arith.muli %arg0, %c1_i32 : i32
    %1 = arith.addi %0, %arg1 : i32
    %c0_i32 = arith.constant 0 : i32
    %c0_i32_0 = arith.constant 0 : i32
    return %1, %c0_i32 : i32, i32
  }
  func.func @transform_1(%arg0: i32, %arg1: i32) -> (i32, i32) {
    %c1_i32 = arith.constant 1 : i32
    %0 = arith.muli %arg0, %c1_i32 : i32
    %1 = arith.addi %0, %arg1 : i32
    %c0_i32 = arith.constant 0 : i32
    %c0_i32_0 = arith.constant 0 : i32
    return %1, %c0_i32 : i32, i32
  }
  func.func @transform_2(%arg0: i32, %arg1: i32) -> (i32, i32) {
    %c0_i32 = arith.constant 0 : i32
    %c0_i32_0 = arith.constant 0 : i32
    return %arg0, %c0_i32 : i32, i32
  }
}

</mosaic_0001>

<bundles_post_ra>
// kernel: tpu_custom_call.1
= control target key start
LH: loop header
LB: loop body
LE: loop exit
PB: predicated region body
PF: predicated region fallthrough
CT: control target
= control target key end

     0   :  { %7 = vsyncpa [#allocation3], 0  ;;  %s275_s0 = inlined_call_operand.hbm [shape: f32[8,512], index: 0, kind: input, shape index: {}]   ;;  %s276_s1 = inlined_call_operand.hbm [shape: f32[8,512], index: 1, kind: input, shape index: {}]   ;;  %s277_s2 = inlined_call_operand.hbm [shape: f32[8,512], index: 2, kind: output, shape index: {}]  }
   0x1   :  { %8 = vsyncpa [#allocation6], 0 }
   0x2   :  { %9 = vsyncpa [#allocation4], 0  ;;  %s221_s9 = smov [#allocation2]   ;;  %s222_s11 = smov [#allocation5]  }
   0x3   :  { %s20_s10 = sshll.u32 %s221_s9, 4  ;;  %s34_s12 = sshll.u32 %s222_s11, 4  ;;  %s21_s10 = int_to_ptr.vmem [resolvable:$true] %s20_s10  ;;  %s35_s12 = int_to_ptr.vmem [resolvable:$true] %s34_s12 }
   0x4   :  { %s149_s15 = scalar_lea.hbm %s275_s0, 512 }
   0x5   :  { %p150_p0 = scmp.ne.s32.totalorder %s275_s0, %s149_s15  ;;  %p153_p1 = scmp.lt.u32.totalorder %s149_s15, %s275_s0 }
   0x7   :  { %p155_p2 = pnand %p153_p1, %p150_p0 }
   0x9   :  { %158 = shalt.err (!%p155_p2)
}
   0xa   :  { %s159_s20 = scalar_lea.vmem %s21_s10, 512  ;;  %p164_p4 = scmp.lt.s32.totalorder %s21_s10, %s21_s10 }
   0xb   :  { %p160_p3 = scmp.ne.s32.totalorder %s21_s10, %s159_s20  ;;  %p165_p5 = scmp.lt.s32.totalorder %s159_s20, %s159_s20 }
   0xd   :  { %p166_p6 = por %p165_p5, %p164_p4 }
   0xf   :  { %p167_p7 = pnand %p166_p6, %p160_p3 }
  0x11   :  { %170 = shalt.err (!%p167_p7)
}
  0x12   :  { %23 = dma.hbm_to_vmem [thread:$0]  %s275_s0, 512, %s21_s10, [#allocation3]  }
  0x13   :  { %s171_s25 = scalar_lea.hbm %s276_s1, 512 }
  0x14   :  { %p172_p8 = scmp.ne.s32.totalorder %s276_s1, %s171_s25  ;;  %p175_p9 = scmp.lt.u32.totalorder %s171_s25, %s276_s1 }
  0x16   :  { %p177_p10 = pnand %p175_p9, %p172_p8 }
  0x18   :  { %180 = shalt.err (!%p177_p10)
}
  0x19   :  { %s181_s30 = scalar_lea.vmem %s35_s12, 512  ;;  %p186_p12 = scmp.lt.s32.totalorder %s35_s12, %s35_s12 }
  0x1a   :  { %p182_p11 = scmp.ne.s32.totalorder %s35_s12, %s181_s30  ;;  %p187_p13 = scmp.lt.s32.totalorder %s181_s30, %s181_s30 }
  0x1c   :  { %p188_p0 = por %p187_p13, %p186_p12 }
  0x1e   :  { %p189_p1 = pnand %p188_p0, %p182_p11 }
  0x20   :  { %192 = shalt.err (!%p189_p1)
}
  0x21   :  { %37 = dma.hbm_to_vmem [thread:$0]  %s276_s1, 512, %s35_s12, [#allocation6]  }
  0x22   :  { %215 = dma.done.wait [#allocation3], 512  }
  0x23   :  { %216 = vsyncadd [#allocation3], 4294966784 }
  0x24   :  { %217 = dma.done.wait [#allocation6], 512  }
  0x25   :  { %218 = vsyncadd [#allocation6], 4294966784  ;;  %v58_v0 = vld [vmem:[#allocation5] sm:$0xff]  ;;  %v59_v2 = vld [vmem:[#allocation5 + $0x8] sm:$0xff]  ;;  %v88_v20 = vlaneseq  ;;  %s223_s1 = smov [#allocation7]  }
  0x26   :  { %v62_v1 = vadd.f32 1e-06, %v58_v0  ;;  %v60_v3 = vld [vmem:[#allocation5 + $0x10] sm:$0xff]  ;;  %v63_v4 = vadd.f32 1e-06, %v59_v2  ;;  %v61_v6 = vld [vmem:[#allocation5 + $0x18] sm:$0xff] }
  0x27   :  { %v64_v5 = vadd.f32 1e-06, %v60_v3  ;;  %v65_v7 = vadd.f32 1e-06, %v61_v6  ;;  %v54_v8 = vld [vmem:[#allocation2] sm:$0xff]  ;;  %v55_v9 = vld [vmem:[#allocation2 + $0x8] sm:$0xff] }
  0x28   :  { %133 = vrcp.f32 %v62_v1  ;;  %v56_v11 = vld [vmem:[#allocation2 + $0x10] sm:$0xff]  ;;  %v57_v14 = vld [vmem:[#allocation2 + $0x18] sm:$0xff]  ;;  %v89_v21 = vshrl.u32 %v88_v20, 7  ;;  %s119_s4 = sshll.u32 %s223_s1, 4  ;;  %s120_s4 = int_to_ptr.vmem [resolvable:$true] %s119_s4 }
  0x29   :  { %135 = vrcp.f32 %v63_v4  ;;  %s193_s5 = scalar_lea.vmem %s120_s4, 512  ;;  %p198_p3 = scmp.lt.s32.totalorder %s120_s4, %s120_s4 }
  0x2a   :  { %137 = vrcp.f32 %v64_v5  ;;  %vm92_vm0 = vcmp.lt.s32.totalorder %v89_v21, 1  ;;  %p194_p2 = scmp.ne.s32.totalorder %s120_s4, %s193_s5  ;;  %p199_p4 = scmp.lt.s32.totalorder %s193_s5, %s193_s5 }
  0x2b   :  { %139 = vrcp.f32 %v65_v7 }
  0x2c   :  { %p200_p5 = por %p199_p4, %p198_p3 }
  0x2e   :  { %p201_p6 = pnand %p200_p5, %p194_p2 }
  0x32   :  { %v134_v10 = vpop.eup %133 }
  0x33   :  { %v136_v12 = vpop.eup %135  ;;  %v67_v13 = vmul.f32 %v134_v10, %v54_v8 }
  0x34   :  { %v138_v15 = vpop.eup %137  ;;  %v69_v16 = vmul.f32 %v136_v12, %v55_v9 }
  0x35   :  { %v140_v17 = vpop.eup %139  ;;  %141 = vlog2.f32 %v67_v13  ;;  %v71_v18 = vmul.f32 %v138_v15, %v56_v11 }
  0x36   :  { %143 = vlog2.f32 %v69_v16  ;;  %v73_v19 = vmul.f32 %v140_v17, %v57_v14 }
  0x37   :  { %145 = vlog2.f32 %v71_v18 }
  0x38   :  { %147 = vlog2.f32 %v73_v19 }
  0x3f   :  { %v142_v22 = vpop.eup %141 }
  0x40   :  { %v144_v23 = vpop.eup %143  ;;  %v75_v24 = vmul.f32 0.6931472, %v142_v22 }
  0x41   :  { %v146_v25 = vpop.eup %145  ;;  %v77_v26 = vmul.f32 0.6931472, %v144_v23 }
  0x42   :  { %v148_v27 = vpop.eup %147  ;;  %v82_v28 = vmul.f32 %v75_v24, %v54_v8  ;;  %v79_v29 = vmul.f32 0.6931472, %v146_v25 }
  0x43   :  { %v83_v30 = vmul.f32 %v77_v26, %v55_v9  ;;  %v81_v31 = vmul.f32 0.6931472, %v148_v27 }
  0x44   :  { %v93_v32 = vsel %vm92_vm0, %v82_v28, 0.0  ;;  %v84_v33 = vmul.f32 %v79_v29, %v56_v11 }
  0x45   :  { %v94_v34 = vsel %vm92_vm0, %v83_v30, 0.0  ;;  %v85_v35 = vmul.f32 %v81_v31, %v57_v14  ;;  %109 = vst [vmem:[#allocation7] sm:$0xff] %v93_v32 }
  0x46   :  { %v95_v36 = vsel %vm92_vm0, %v84_v33, 0.0  ;;  %110 = vst [vmem:[#allocation7 + $0x8] sm:$0xff] %v94_v34 }
  0x47   :  { %v96_v37 = vsel %vm92_vm0, %v85_v35, 0.0  ;;  %111 = vst [vmem:[#allocation7 + $0x10] sm:$0xff] %v95_v36 }
  0x48   :  { %112 = vst [vmem:[#allocation7 + $0x18] sm:$0xff] %v96_v37 }
  0x49   :  { %204 = shalt.err (!%p201_p6)
}
  0x4a   :  { %s205_s8 = scalar_lea.hbm %s277_s2, 512 }
  0x4b   :  { %p206_p7 = scmp.ne.s32.totalorder %s277_s2, %s205_s8  ;;  %p209_p8 = scmp.lt.u32.totalorder %s205_s8, %s277_s2 }
  0x4d   :  { %p211_p9 = pnand %p209_p8, %p206_p7 }
  0x4f   :  { %214 = shalt.err (!%p211_p9)
}
  0x50   :  { %122 = dma.vmem_to_hbm [thread:$0]  %s120_s4, 512, %s277_s2, [#allocation4]  }
  0x51   :  { %219 = dma.done.wait [#allocation4], 512  }
  0x52   :  { %220 = vsyncadd [#allocation4], 4294966784 }
  0x53   :  { %126 = vsyncpa [#allocation3], 1 }
  0x54   :  { %127 = vsyncpa [#allocation6], 1 }
  0x55   :  { %128 = vsyncpa [#allocation4], 1 }

</bundles_post_ra>
